<compile_context>
chip_gen: v7x
topology: tpu7x:2x2x1
jax: 0.10.0
libtpu: 0.0.40
codegen_flags: <defaults>
</compile_context>

<pallas_src>
import functools

import jax
import jax.numpy as jnp
from jax.experimental import pallas as pl
from jax.experimental.pallas import tpu as pltpu

LANES = 128
MAX_TILE_ROWS = 4096   # 4096 x 128 f32 = 2 MiB per input per grid step
STRIP_ROWS = 256       # in-kernel compute strip; keeps temporaries in vregs


def _round_up(x, m):
    return ((x + m - 1) // m) * m


def _sublane_multiple(*dtypes):
    """Row-dim packing requirement of the VMEM tile layout (8 f32 / 16 bf16 / 32 int8)."""
    req = 8
    for dt in dtypes:
        req = max(req, {4: 8, 2: 16, 1: 32}.get(jnp.dtype(dt).itemsize, 8))
    return req


def _default_num_slices():
    """2 reduction slices (one per TensorCore) on multi-TC chips (v7x); 1 elsewhere."""
    try:
        kind = jax.devices()[0].device_kind.lower()
    except Exception:  # pragma: no cover
        return 1
    return 2 if "v7" in kind else 1


def _focal_loss_kernel(pred_ref, gt_ref, out_ref, acc_loss_ref, acc_npos_ref,
                       *, valid_rows, has_tail):
    """One (tile_rows, 128) block: strip-mined elementwise focal terms folded into two
    (8, 128) VMEM accumulators; one cross-lane reduce per slice writes (loss_sum, num_pos)
    to this slice's SMEM output row."""
    k = pl.program_id(1)
    tile_rows, lanes = pred_ref.shape

    @pl.when(k == 0)
    def _():
        acc_loss_ref[...] = jnp.zeros_like(acc_loss_ref)
        acc_npos_ref[...] = jnp.zeros_like(acc_npos_ref)

    # Unclamped linear block id -> global row offset of this block. Clamped duplicate
    # blocks (ragged slice split) get row_start >= valid_rows and skip all compute.
    lin_block = pl.program_id(0) * pl.num_programs(1) + k
    row_start = lin_block * tile_rows

    strip = min(STRIP_ROWS, tile_rows)        # static, multiple of 8
    n_full = tile_rows // strip
    rem = tile_rows - n_full * strip          # static remainder strip (multiple of 8)

    def strip_sums(r0, strip_rows, masked):
        p = pred_ref[pl.ds(r0, strip_rows), :].astype(jnp.float32)
        g = gt_ref[pl.ds(r0, strip_rows), :].astype(jnp.float32)
        pos = g == 1.0
        one_m_p = 1.0 - p
        # Single EUP log via operand select, single selected weight.
        logx = jnp.log(jnp.where(pos, p, one_m_p))
        omg = 1.0 - g
        omg2 = omg * omg
        w = jnp.where(pos, one_m_p * one_m_p, (p * p) * (omg2 * omg2))
        # g > 1 (incl. the gt=2 ragged pad) contributes to neither pos nor neg term.
        loss = jnp.where(g <= 1.0, logx * w, 0.0)
        npos = jnp.where(pos, 1.0, 0.0)
        if masked:
            # Only boundary / duplicate blocks pay the row-validity mask. Mask AFTER the
            # math so garbage rows (even NaN/inf) cannot poison the sums.
            rid = jax.lax.broadcasted_iota(jnp.int32, (strip_rows, lanes), 0)
            valid = (row_start + r0 + rid) < valid_rows
            loss = jnp.where(valid, loss, 0.0)
            npos = jnp.where(valid, npos, 0.0)
        # Fold the strip to one (8, lanes) vreg each: pure VALU vreg adds.
        return (loss.reshape(-1, 8, lanes).sum(axis=0),
                npos.reshape(-1, 8, lanes).sum(axis=0))

    def accumulate(masked):
        def body(s, carry):
            la, na = carry
            r0 = pl.multiple_of(s * strip, strip)
            dl, dn = strip_sums(r0, strip, masked)
            return la + dl, na + dn

        init = (jnp.zeros((8, lanes), jnp.float32),
                jnp.zeros((8, lanes), jnp.float32))
        la, na = jax.lax.fori_loop(0, n_full, body, init)
        if rem:
            dl, dn = strip_sums(n_full * strip, rem, masked)
            la, na = la + dl, na + dn
        acc_loss_ref[...] += la
        acc_npos_ref[...] += na

    if not has_tail:
        # Every block is a full interior block: unconditional unmasked fast path.
        accumulate(masked=False)
    else:
        @pl.when(row_start + tile_rows <= valid_rows)
        def _():
            accumulate(masked=False)          # full interior block

        @pl.when(jnp.logical_and(row_start + tile_rows > valid_rows,
                                 row_start < valid_rows))
        def _():
            accumulate(masked=True)           # partial boundary block
        # row_start >= valid_rows: clamped duplicate block -> skip all compute.

    @pl.when(k == pl.num_programs(1) - 1)
    def _():
        out_ref[0, 0] = jnp.sum(acc_loss_ref[...])
        out_ref[0, 1] = jnp.sum(acc_npos_ref[...])


def _focal_loss_impl(pred, gt, num_slices, max_tile_rows):
    """JAX/Pallas equivalent of FocalLoss().forward(pred, gt). Returns an f32 scalar."""
    assert pred.shape == gt.shape, (pred.shape, gt.shape)
    n = pred.size
    sub = _sublane_multiple(pred.dtype, gt.dtype)

    rows = _round_up(-(-n // LANES), sub)     # rows of the lane-dense (rows, 128) slab
    n_slab = rows * LANES

    pred_f = jnp.ravel(pred)
    gt_f = jnp.ravel(gt)
    if n_slab != n:
        # Ragged numel: neutral pad (gt=2 > 1 contributes to neither term and is not a
        # positive; pred=0.5 keeps the log finite). Only taken when not lane-aligned.
        pad = n_slab - n
        pred_f = jnp.pad(pred_f, (0, pad), constant_values=0.5)
        gt_f = jnp.pad(gt_f, (0, pad), constant_values=2.0)
    pred2d = pred_f.reshape(rows, LANES)
    gt2d = gt_f.reshape(rows, LANES)

    tile_rows = min(max_tile_rows, rows)
    if tile_rows < rows:
        tile_rows = max(sub, (tile_rows // sub) * sub)
    total_blocks = -(-rows // tile_rows)

    slices = max(1, min(num_slices, total_blocks))
    blocks_per_slice = -(-total_blocks // slices)
    need_clamp = slices * blocks_per_slice != total_blocks
    has_tail = need_clamp or (total_blocks * tile_rows != rows)

    def in_idx(pi, ki):
        lin = pi * blocks_per_slice + ki
        if need_clamp:
            # Never DMA a fully out-of-range block; the duplicate skips compute in-kernel.
            lin = jnp.minimum(lin, total_blocks - 1)
        return (lin, 0)

    in_block_bytes = tile_rows * LANES * (jnp.dtype(pred.dtype).itemsize
                                          + jnp.dtype(gt.dtype).itemsize)
    # Double-buffered inputs + scratch/headroom; stays within every chip's physical VMEM.
    vmem_limit = int(min(2 * in_block_bytes + (8 << 20), 32 << 20))

    partials = pl.pallas_call(
        functools.partial(_focal_loss_kernel, valid_rows=rows, has_tail=has_tail),
        out_shape=jax.ShapeDtypeStruct((slices, 2), jnp.float32),
        grid_spec=pltpu.PrefetchScalarGridSpec(
            num_scalar_prefetch=0,
            grid=(slices, blocks_per_slice),
            in_specs=[
                pl.BlockSpec((tile_rows, LANES), in_idx),
                pl.BlockSpec((tile_rows, LANES), in_idx),
            ],
            out_specs=pl.BlockSpec((1, 2), lambda pi, ki: (pi, 0),
                                   memory_space=pltpu.SMEM),
            scratch_shapes=[
                pltpu.VMEM((8, LANES), jnp.float32),   # loss_sum accumulator
                pltpu.VMEM((8, LANES), jnp.float32),   # num_pos accumulator
            ],
        ),
        compiler_params=pltpu.CompilerParams(
            dimension_semantics=("parallel", "arbitrary"),
            vmem_limit_bytes=vmem_limit),
    )(pred2d, gt2d)

    loss_sum = jnp.sum(partials[:, 0])
    num_pos = jnp.sum(partials[:, 1])
    # pos_loss is identically 0 when num_pos == 0, so -loss_sum == -neg_loss there.
    return jnp.where(num_pos == 0.0, -loss_sum, -loss_sum / num_pos)


@functools.partial(jax.jit, static_argnames=("num_slices", "max_tile_rows"))
def _focal_loss_jit(pred, gt, num_slices, max_tile_rows):
    return _focal_loss_impl(pred, gt, num_slices, max_tile_rows)


def focal_loss(pred, gt, num_slices=None, max_tile_rows=MAX_TILE_ROWS):
    if num_slices is None:
        num_slices = _default_num_slices()
    return _focal_loss_jit(pred, gt, num_slices, max_tile_rows)


def _focal_loss_ref(pred, gt):
    """Pure-JAX reference mirroring the PyTorch _neg_loss."""
    pred = pred.astype(jnp.float32)
    gt = gt.astype(jnp.float32)
    pos_inds = (gt == 1.0).astype(jnp.float32)
    neg_inds = (gt < 1.0).astype(jnp.float32)
    neg_weights = (1.0 - gt) ** 4
    pos_loss = jnp.log(pred) * (1.0 - pred) ** 2 * pos_inds
    neg_loss = jnp.log(1.0 - pred) * pred ** 2 * neg_weights * neg_inds
    num_pos = pos_inds.sum()
    pos_loss = pos_loss.sum()
    neg_loss = neg_loss.sum()
    return jnp.where(num_pos == 0.0, -neg_loss, -(pos_loss + neg_loss) / num_pos)


if __name__ == "__main__":
    key = jax.random.PRNGKey(0)
    k1, k2, k3, k4, k5, k6 = jax.random.split(key, 6)

    # --- primary example: NCHW heatmaps (batch=2, channels=4, 16x16), module convention ---
    B, C, H, W = 2, 4, 16, 16
    pred = jnp.clip(jax.nn.sigmoid(jax.random.normal(k1, (B, C, H, W), jnp.float32)),
                    1e-4, 1.0 - 1e-4)
    gt = jax.random.uniform(k2, (B, C, H, W), jnp.float32)
    gt = gt.at[:, :, 4, 7].set(1.0)
    gt = gt.at[:, :, 10, 3].set(1.0)
    loss = focal_loss(pred, gt)
    jax.block_until_ready(loss)
    ref = _focal_loss_ref(pred, gt)
    assert jnp.allclose(loss, ref, rtol=1e-4, atol=1e-5), (loss, ref)

    # --- ragged numel: exercises the neutral-pad path ---
    shape2 = (2, 3, 13, 17)
    pred2 = jnp.clip(jax.nn.sigmoid(jax.random.normal(k3, shape2, jnp.float32)),
                     1e-4, 1.0 - 1e-4)
    gt2 = jax.random.uniform(k4, shape2, jnp.float32)
    gt2 = gt2.at[0, 1, 5, 9].set(1.0)
    loss2 = focal_loss(pred2, gt2)
    jax.block_until_ready(loss2)
    ref2 = _focal_loss_ref(pred2, gt2)
    assert jnp.allclose(loss2, ref2, rtol=1e-4, atol=1e-5), (loss2, ref2)

    # --- larger heatmap (3000 rows x 128 lanes): multi-block / multi-slice paths ---
    shape3 = (4, 10, 100, 96)
    pred3 = jnp.clip(jax.nn.sigmoid(jax.random.normal(k5, shape3, jnp.float32)),
                     1e-4, 1.0 - 1e-4)
    gt3 = jax.random.uniform(k6, shape3, jnp.float32)
    gt3 = gt3.at[:, :, 11, 23].set(1.0)
    ref3 = _focal_loss_ref(pred3, gt3)

    # (a) default config: single block, remainder strip inside the kernel.
    loss3a = focal_loss(pred3, gt3)
    jax.block_until_ready(loss3a)
    assert jnp.allclose(loss3a, ref3, rtol=1e-4, atol=1e-5), (loss3a, ref3)

    # (b) forced 2-slice split, even block count, partial boundary block (masked path).
    loss3b = focal_loss(pred3, gt3, num_slices=2, max_tile_rows=512)
    jax.block_until_ready(loss3b)
    assert jnp.allclose(loss3b, ref3, rtol=1e-4, atol=1e-5), (loss3b, ref3)

    # (c) forced 2-slice split, odd block count: clamped duplicate block (compute skipped)
    #     plus the genuine partial tail block.
    loss3c = focal_loss(pred3, gt3, num_slices=2, max_tile_rows=1024)
    jax.block_until_ready(loss3c)
    assert jnp.allclose(loss3c, ref3, rtol=1e-4, atol=1e-5), (loss3c, ref3)

    print("KERNEL_OK")
</pallas_src>

<mosaic_0001>
module attributes {stable_mosaic.version = 11 : i64} {
  func.func @_focal_loss_kernel(%arg0: i32, %arg1: i32, %arg2: memref<16x128xf32, #tpu.memory_space<vmem>>, %arg3: memref<16x128xf32, #tpu.memory_space<vmem>>, %arg4: memref<1x2xf32, #tpu.memory_space<smem>>, %arg5: memref<8x128xf32, #tpu.memory_space<vmem>>, %arg6: memref<8x128xf32, #tpu.memory_space<vmem>>) attributes {dimension_semantics = [#tpu.dimension_semantics<parallel>, #tpu.dimension_semantics<arbitrary>], iteration_bounds = array<i64: 1, 1>, scalar_prefetch = 0 : i64, scratch_operands = 2 : i64, tpu.core_type = #tpu.core_type<tc>, window_params = [{transform_indices = @transform_0, window_bounds = array<i64: 16, 128>}, {transform_indices = @transform_1, window_bounds = array<i64: 16, 128>}, {transform_indices = @transform_2, window_bounds = array<i64: 1, 2>}]} {
    %c0_i32 = arith.constant 0 : i32
    %0 = arith.cmpi eq, %arg1, %c0_i32 : i32
    %1 = arith.extui %0 : i1 to i32
    %c0_i32_0 = arith.constant 0 : i32
    %2 = arith.cmpi ne, %1, %c0_i32_0 : i32
    scf.if %2 {
      %cst_23 = arith.constant 0.000000e+00 : f32
      %48 = vector.broadcast %cst_23 : f32 to vector<8x128xf32>
      %c0_24 = arith.constant 0 : index
      %c0_25 = arith.constant 0 : index
      %49 = vector.load %arg5[%c0_24, %c0_25] : memref<8x128xf32, #tpu.memory_space<vmem>>, vector<8x128xf32>
      tpu.vector_store %arg5[%c0_24, %c0_25], %48 {strides = array<i32>} : memref<8x128xf32, #tpu.memory_space<vmem>>, vector<8x128xf32>,
      %cst_26 = arith.constant 0.000000e+00 : f32
      %50 = vector.broadcast %cst_26 : f32 to vector<8x128xf32>
      %c0_27 = arith.constant 0 : index
      %c0_28 = arith.constant 0 : index
      %51 = vector.load %arg6[%c0_27, %c0_28] : memref<8x128xf32, #tpu.memory_space<vmem>>, vector<8x128xf32>
      tpu.vector_store %arg6[%c0_27, %c0_28], %50 {strides = array<i32>} : memref<8x128xf32, #tpu.memory_space<vmem>>, vector<8x128xf32>,
    } else {
    }
    %cst = arith.constant 0.000000e+00 : f32
    %3 = vector.broadcast %cst : f32 to vector<8x128xf32>
    %cst_1 = arith.constant 0.000000e+00 : f32
    %4 = vector.broadcast %cst_1 : f32 to vector<8x128xf32>
    %c0_i32_2 = arith.constant 0 : i32
    %c16_i32 = arith.constant 16 : i32
    %5 = arith.muli %c0_i32_2, %c16_i32 : i32
    %6 = tpu.assume_multiple %5, 16 : i32
    %7 = arith.index_cast %6 : i32 to index
    %c0 = arith.constant 0 : index
    %8 = vector.load %arg2[%7, %c0] : memref<16x128xf32, #tpu.memory_space<vmem>>, vector<16x128xf32>
    %9 = arith.index_cast %6 : i32 to index
    %c0_3 = arith.constant 0 : index
    %10 = vector.load %arg3[%9, %c0_3] : memref<16x128xf32, #tpu.memory_space<vmem>>, vector<16x128xf32>
    %cst_4 = arith.constant 1.000000e+00 : f32
    %11 = vector.broadcast %cst_4 : f32 to vector<16x128xf32>
    %12 = arith.cmpf oeq, %10, %11 : vector<16x128xf32>
    %cst_5 = arith.constant 1.000000e+00 : f32
    %13 = vector.broadcast %cst_5 : f32 to vector<16x128xf32>
    %14 = arith.subf %13, %8 : vector<16x128xf32>
    %15 = arith.select %12, %8, %14 : vector<16x128xi1>, vector<16x128xf32>
    %16 = math.log %15 : vector<16x128xf32>
    %cst_6 = arith.constant 1.000000e+00 : f32
    %17 = vector.broadcast %cst_6 : f32 to vector<16x128xf32>
    %18 = arith.subf %17, %10 : vector<16x128xf32>
    %19 = arith.mulf %18, %18 : vector<16x128xf32>
    %20 = arith.mulf %14, %14 : vector<16x128xf32>
    %21 = arith.mulf %8, %8 : vector<16x128xf32>
    %22 = arith.mulf %19, %19 : vector<16x128xf32>
    %23 = arith.mulf %21, %22 : vector<16x128xf32>
    %24 = arith.select %12, %20, %23 : vector<16x128xi1>, vector<16x128xf32>
    %cst_7 = arith.constant 1.000000e+00 : f32
    %25 = vector.broadcast %cst_7 : f32 to vector<16x128xf32>
    %26 = arith.cmpf ole, %10, %25 : vector<16x128xf32>
    %27 = arith.mulf %16, %24 : vector<16x128xf32>
    %cst_8 = arith.constant 0.000000e+00 : f32
    %28 = vector.broadcast %cst_8 : f32 to vector<16x128xf32>
    %29 = arith.select %26, %27, %28 : vector<16x128xi1>, vector<16x128xf32>
    %cst_9 = arith.constant 1.000000e+00 : f32
    %cst_10 = arith.constant 0.000000e+00 : f32
    %30 = vector.broadcast %cst_9 : f32 to vector<16x128xf32>
    %31 = vector.broadcast %cst_10 : f32 to vector<16x128xf32>
    %32 = arith.select %12, %30, %31 : vector<16x128xi1>, vector<16x128xf32>
    %33 = vector.shape_cast %29 : vector<16x128xf32> to vector<2x8x128xf32>
    %cst_11 = arith.constant dense<0.000000e+00> : vector<8x128xf32>
    %34 = vector.multi_reduction <add>, %33, %cst_11 [0] : vector<2x8x128xf32> to vector<8x128xf32>
    %35 = vector.shape_cast %32 : vector<16x128xf32> to vector<2x8x128xf32>
    %cst_12 = arith.constant dense<0.000000e+00> : vector<8x128xf32>
    %36 = vector.multi_reduction <add>, %35, %cst_12 [0] : vector<2x8x128xf32> to vector<8x128xf32>
    %37 = arith.addf %3, %34 : vector<8x128xf32>
    %38 = arith.addf %4, %36 : vector<8x128xf32>
    %c1_i32 = arith.constant 1 : i32
    %c0_13 = arith.constant 0 : index
    %c0_14 = arith.constant 0 : index
    %39 = vector.load %arg5[%c0_13, %c0_14] : memref<8x128xf32, #tpu.memory_space<vmem>>, vector<8x128xf32>
    %40 = arith.addf %39, %37 : vector<8x128xf32>
    %c0_15 = arith.constant 0 : index
    %c0_16 = arith.constant 0 : index
    %41 = vector.load %arg5[%c0_15, %c0_16] : memref<8x128xf32, #tpu.memory_space<vmem>>, vector<8x128xf32>
    tpu.vector_store %arg5[%c0_15, %c0_16], %40 {strides = array<i32>} : memref<8x128xf32, #tpu.memory_space<vmem>>, vector<8x128xf32>,
    %c0_17 = arith.constant 0 : index
    %c0_18 = arith.constant 0 : index
    %42 = vector.load %arg6[%c0_17, %c0_18] : memref<8x128xf32, #tpu.memory_space<vmem>>, vector<8x128xf32>
    %43 = arith.addf %42, %38 : vector<8x128xf32>
    %c0_19 = arith.constant 0 : index
    %c0_20 = arith.constant 0 : index
    %44 = vector.load %arg6[%c0_19, %c0_20] : memref<8x128xf32, #tpu.memory_space<vmem>>, vector<8x128xf32>
    tpu.vector_store %arg6[%c0_19, %c0_20], %43 {strides = array<i32>} : memref<8x128xf32, #tpu.memory_space<vmem>>, vector<8x128xf32>,
    %c0_i32_21 = arith.constant 0 : i32
    %45 = arith.cmpi eq, %arg1, %c0_i32_21 : i32
    %46 = arith.extui %45 : i1 to i32
    %c0_i32_22 = arith.constant 0 : i32
    %47 = arith.cmpi ne, %46, %c0_i32_22 : i32
    scf.if %47 {
      %c0_23 = arith.constant 0 : index
      %c0_24 = arith.constant 0 : index
      %48 = vector.load %arg5[%c0_23, %c0_24] : memref<8x128xf32, #tpu.memory_space<vmem>>, vector<8x128xf32>
      %49 = vector.shape_cast %48 : vector<8x128xf32> to vector<1x8x128xf32>
      %cst_25 = arith.constant dense<0.000000e+00> : vector<1xf32>
      %50 = vector.multi_reduction <add>, %49, %cst_25 [1, 2] : vector<1x8x128xf32> to vector<1xf32>
      %51 = vector.shape_cast %50 : vector<1xf32> to vector<1x1x1xf32>
      %52 = vector.extract %51[0, 0, 0] : f32 from vector<1x1x1xf32>
      %c0_26 = arith.constant 0 : index
      %c0_27 = arith.constant 0 : index
      %53 = memref.load %arg4[%c0_26, %c0_27] : memref<1x2xf32, #tpu.memory_space<smem>>
      memref.store %52, %arg4[%c0_26, %c0_27] : memref<1x2xf32, #tpu.memory_space<smem>>
      %c0_28 = arith.constant 0 : index
      %c0_29 = arith.constant 0 : index
      %54 = vector.load %arg6[%c0_28, %c0_29] : memref<8x128xf32, #tpu.memory_space<vmem>>, vector<8x128xf32>
      %55 = vector.shape_cast %54 : vector<8x128xf32> to vector<1x8x128xf32>
      %cst_30 = arith.constant dense<0.000000e+00> : vector<1xf32>
      %56 = vector.multi_reduction <add>, %55, %cst_30 [1, 2] : vector<1x8x128xf32> to vector<1xf32>
      %57 = vector.shape_cast %56 : vector<1xf32> to vector<1x1x1xf32>
      %58 = vector.extract %57[0, 0, 0] : f32 from vector<1x1x1xf32>
      %c0_31 = arith.constant 0 : index
      %c1 = arith.constant 1 : index
      %59 = memref.load %arg4[%c0_31, %c1] : memref<1x2xf32, #tpu.memory_space<smem>>
      memref.store %58, %arg4[%c0_31, %c1] : memref<1x2xf32, #tpu.memory_space<smem>>
    } else {
    }
    return
  }
  func.func @transform_0(%arg0: i32, %arg1: i32) -> (i32, i32) {
    %c1_i32 = arith.constant 1 : i32
    %0 = arith.muli %arg0, %c1_i32 : i32
    %1 = arith.addi %0, %arg1 : i32
    %c0_i32 = arith.constant 0 : i32
    %c0_i32_0 = arith.constant 0 : i32
    return %1, %c0_i32 : i32, i32
  }
  func.func @transform_1(%arg0: i32, %arg1: i32) -> (i32, i32) {
    %c1_i32 = arith.constant 1 : i32
    %0 = arith.muli %arg0, %c1_i32 : i32
    %1 = arith.addi %0, %arg1 : i32
    %c0_i32 = arith.constant 0 : i32
    %c0_i32_0 = arith.constant 0 : i32
    return %1, %c0_i32 : i32, i32
  }
  func.func @transform_2(%arg0: i32, %arg1: i32) -> (i32, i32) {
    %c0_i32 = arith.constant 0 : i32
    %c0_i32_0 = arith.constant 0 : i32
    return %arg0, %c0_i32 : i32, i32
  }
}

</mosaic_0001>

<bundles_post_ra>
// kernel: _focal_loss_jit.1
= control target key start
LH: loop header
LB: loop body
LE: loop exit
PB: predicated region body
PF: predicated region fallthrough
CT: control target
= control target key end

     0   :  { %s224_s0 = inlined_call_operand.vmem [shape: f32[16,128], index: 0, kind: input, shape index: {}]   ;;  %s225_s1 = inlined_call_operand.vmem [shape: f32[16,128], index: 1, kind: input, shape index: {}]   ;;  %s226_s2 = inlined_call_operand.vmem [shape: f32[1,2], index: 2, kind: output, shape index: {}]  }
   0x1   :  { %v62_v0 = vld [vmem:[%s224_s0] sm:$0xff]  ;;  %v63_v1 = vld [vmem:[%s224_s0 + $0x8] sm:$0xff] }
   0x2   :  { %v64_v2 = vld [vmem:[%s225_s1] sm:$0xff]  ;;  %v65_v3 = vld [vmem:[%s225_s1 + $0x8] sm:$0xff]  ;;  %v68_v4 = vsub.f32 1.0, %v62_v0  ;;  %v69_v5 = vsub.f32 1.0, %v63_v1 }
   0x3   :  { %vm66_vm0 = vcmp.eq.f32.partialorder %v64_v2, 1.0  ;;  %v76_v6 = vsub.f32 1.0, %v64_v2  ;;  %vm67_vm1 = vcmp.eq.f32.partialorder %v65_v3, 1.0  ;;  %v77_v7 = vsub.f32 1.0, %v65_v3 }
   0x4   :  { %7 = vsyncpa [#allocation5], 0  ;;  %v70_v8 = vsel %vm66_vm0, %v62_v0, %v68_v4  ;;  %v71_v9 = vsel %vm67_vm1, %v63_v1, %v69_v5  ;;  %v82_v12 = vmul.f32 %v62_v0, %v62_v0  ;;  %v83_v14 = vmul.f32 %v63_v1, %v63_v1  ;;  %s141_s18 = sshll.u32 %s226_s2, 4  ;;  %s142_s18 = int_to_ptr.vmem [resolvable:$true] %s141_s18 }
   0x5   :  { %v78_v10 = vmul.f32 %v76_v6, %v76_v6  ;;  %168 = vlog2.f32 %v70_v8  ;;  %v79_v11 = vmul.f32 %v77_v7, %v77_v7  ;;  %v80_v16 = vmul.f32 %v68_v4, %v68_v4  ;;  %s172_s20 = scalar_lea.vmem %s142_s18, 16  ;;  %p177_p1 = scmp.lt.s32.totalorder %s142_s18, %s142_s18 }
   0x6   :  { %170 = vlog2.f32 %v71_v9  ;;  %v81_v18 = vmul.f32 %v69_v5, %v69_v5  ;;  %vm90_vm2 = vcmp.le.f32.partialorder %v64_v2, 1.0  ;;  %vm91_vm3 = vcmp.le.f32.partialorder %v65_v3, 1.0  ;;  %p173_p0 = scmp.ne.s32.totalorder %s142_s18, %s172_s20  ;;  %p178_p2 = scmp.lt.s32.totalorder %s172_s20, %s172_s20 }
   0x7   :  { %v84_v13 = vmul.f32 %v78_v10, %v78_v10  ;;  %v85_v15 = vmul.f32 %v79_v11, %v79_v11  ;;  %v186_v30 = vmov 0.0  }
   0x8   :  { %v96_v31 = vsel %vm66_vm0, 1.0, %v186_v30  ;;  %v97_v32 = vsel %vm67_vm1, 1.0, %v186_v30  ;;  %p179_p3 = por %p178_p2, %p177_p1 }
   0x9   :  { %v86_v17 = vmul.f32 %v84_v13, %v82_v12  ;;  %v87_v19 = vmul.f32 %v85_v15, %v83_v14  ;;  %v99_v34 = vadd.f32 %v97_v32, %v96_v31 }
   0xa   :  { %p180_p4 = pnand %p179_p3, %p173_p0 }
   0xb   :  { %v88_v21 = vsel %vm66_vm0, %v80_v16, %v86_v17  ;;  %v89_v24 = vsel %vm67_vm1, %v81_v18, %v87_v19 }
   0xf   :  { %v169_v20 = vpop.eup %168 }
  0x10   :  { %v171_v22 = vpop.eup %170  ;;  %v73_v23 = vmul.f32 0.6931472, %v169_v20 }
  0x11   :  { %v75_v25 = vmul.f32 0.6931472, %v171_v22 }
  0x12   :  { %v92_v26 = vmul.f32 %v88_v21, %v73_v23 }
  0x13   :  { %v93_v27 = vmul.f32 %v89_v24, %v75_v25 }
  0x14   :  { %v94_v28 = vsel %vm90_vm2, %v92_v26, 0.0 }
  0x15   :  { %v95_v29 = vsel %vm91_vm3, %v93_v27, 0.0 }
  0x16   :  { %v98_v33 = vadd.f32 %v95_v29, %v94_v28 }
  0x18   :  { %112 = vadd.xlane.f32.xlu0 %v98_v33 }
  0x1c   :  { %124 = vadd.xlane.f32.xlu0 %v99_v34 }
  0xa5   :  { %v113_v35 = vpop.xlane.xlu0 %112 }
  0xa6   :  { %v114_v36 = vrot.slane %v113_v35, 4 }
  0xa8   :  { %v115_v37 = vadd.f32 %v114_v36, %v113_v35 }
  0xa9   :  { %v125_v38 = vpop.xlane.xlu0 %124 }
  0xaa   :  { %v116_v39 = vrot.slane %v115_v37, 2  ;;  %v126_v40 = vrot.slane %v125_v38, 4 }
  0xac   :  { %v127_v41 = vadd.f32 %v126_v40, %v125_v38  ;;  %v117_v42 = vadd.f32 %v116_v39, %v115_v37 }
  0xae   :  { %v128_v43 = vrot.slane %v127_v41, 2  ;;  %v118_v44 = vrot.slane %v117_v42, 1 }
  0xb0   :  { %v129_v45 = vadd.f32 %v128_v43, %v127_v41  ;;  %v119_v46 = vadd.f32 %v118_v44, %v117_v42 }
  0xb2   :  { %162 = vpush %v119_v46  ;;  %v130_v47 = vrot.slane %v129_v45, 1 }
  0xb4   :  { %v131_v48 = vadd.f32 %v130_v47, %v129_v45 }
  0xb6   :  { %164 = vpush %v131_v48 }
  0xe3   :  { %s163_s0 = spop %162 }
  0xe4   :  { %122 = sst [smem:[#allocation4]] %s163_s0 }
  0xe7   :  { %s165_s19 = spop %164 }
  0xe8   :  { %134 = sst [smem:[#allocation4 + $0x1]] %s165_s19 }
  0xe9   :  { %183 = shalt.err (!%p180_p4)
}
  0xea   :  { %s187_s21 = smov [#allocation4]  }
  0xeb   :  { %144 = dma.smem_to_vmem %s187_s21, 16, %s142_s18, [#allocation5]  }
  0xec   :  { %184 = dma.done.wait [#allocation5], 16  }
  0xed   :  { %185 = vsyncadd [#allocation5], 4294967280 }
  0xee   :  { %148 = sfence }
  0xef   :  { %149 = vsyncpa [#allocation5], 1 }

</bundles_post_ra>
